<compile_context>
chip_gen: v6e
topology: v6e:2x2x1
jax: 0.10.0
libtpu: 0.0.40
codegen_flags: <defaults>
</compile_context>

<pallas_src>
import jax
import jax.numpy as jnp
from jax.experimental import pallas as pl
from jax.experimental.pallas import tpu as pltpu

BN_EPS = 1e-5


# ---------------------------------------------------------------------------
# pass 1: 1x1 conv (channel matmul) + per-channel moment accumulation
# ---------------------------------------------------------------------------
def _conv_stats_kernel(x_ref, w_ref, y_ref, sum_ref, ssq_ref):
    # x_ref:   (C_in,  tile_L)     batch dim squeezed
    # w_ref:   (C_out, C_in)
    # y_ref:   (C_out, tile_L)     pre-BN conv output tile
    # sum_ref: (C_out, 1)          resident accumulator (sum of y over B*L)
    # ssq_ref: (C_out, 1)          resident accumulator (sum of y^2 over B*L)
    @pl.when((pl.program_id(0) == 0) & (pl.program_id(1) == 0))
    def _():
        sum_ref[...] = jnp.zeros_like(sum_ref)
        ssq_ref[...] = jnp.zeros_like(ssq_ref)

    y = jnp.dot(w_ref[...], x_ref[...], preferred_element_type=jnp.float32)
    y_ref[...] = y.astype(y_ref.dtype)
    # Per-tile partial sums: small XLU reduces that hide under the next tile's DMA/MXU.
    sum_ref[...] += jnp.sum(y, axis=1, keepdims=True)
    ssq_ref[...] += jnp.sum(y * y, axis=1, keepdims=True)


# ---------------------------------------------------------------------------
# pass 2: folded BN affine + ReLU, in place over the y buffer
# ---------------------------------------------------------------------------
def _scale_shift_relu_kernel(y_ref, scale_ref, shift_ref, o_ref):
    # y_ref: (C_out, tile_L), scale/shift: (C_out, 1), o_ref: (C_out, tile_L)
    out = scale_ref[...] * y_ref[...] + shift_ref[...]
    o_ref[...] = jnp.maximum(out, 0.0).astype(o_ref.dtype)


def _pick_tile_l(L):
    """Largest lane tile (multiple of 128) that divides L, capped at 2048 (v7x-safe)."""
    if L <= 2048:
        return L
    for t in (2048, 1024, 512, 256, 128):
        if L % t == 0:
            return t
    # TODO(synk): pad non-divisible L instead of falling back to a full-row tile.
    return L


def _vmem_limit(block_bytes):
    needed = block_bytes + (4 << 20)          # cushion for Mosaic internals
    return int(min(max(needed, 16 << 20), 64 << 20))


def _conv_bn_relu_1d_impl(x, weight, bias, gamma, beta):
    """x: (B, C_in, L) f32.  weight: (C_out, C_in, 1).  Returns (B, C_out, L)."""
    B, C_in, L = x.shape
    C_out = weight.shape[0]
    assert weight.shape == (C_out, C_in, 1), "only kernel_size=1 is supported"
    # TODO(synk): general kernel_size>1 Conv1d (sliding window) not implemented.
    del bias  # cancels exactly under training-mode BatchNorm mean subtraction

    tile_l = _pick_tile_l(L)
    n_tiles = L // tile_l
    grid = (B, n_tiles)

    w2d = weight[:, :, 0].astype(jnp.float32)          # (C_out, C_in)
    x = x.astype(jnp.float32)

    x_blk = C_in * tile_l * 4
    y_blk = C_out * tile_l * 4
    small = C_out * C_in * 4 + 8 * C_out * 4
    vmem1 = _vmem_limit(2 * (x_blk + y_blk) + small)   # 2x = double buffering
    vmem2 = _vmem_limit(4 * y_blk + small)

    # ---- pass 1: conv + moments -------------------------------------------------
    y, s1, s2 = pl.pallas_call(
        _conv_stats_kernel,
        out_shape=(
            jax.ShapeDtypeStruct((B, C_out, L), jnp.float32),
            jax.ShapeDtypeStruct((C_out, 1), jnp.float32),
            jax.ShapeDtypeStruct((C_out, 1), jnp.float32),
        ),
        grid=grid,
        in_specs=[
            pl.BlockSpec((pl.Squeezed(), C_in, tile_l), lambda b, t: (b, 0, t)),
            pl.BlockSpec((C_out, C_in), lambda b, t: (0, 0)),
        ],
        out_specs=(
            pl.BlockSpec((pl.Squeezed(), C_out, tile_l), lambda b, t: (b, 0, t)),
            pl.BlockSpec((C_out, 1), lambda b, t: (0, 0)),
            pl.BlockSpec((C_out, 1), lambda b, t: (0, 0)),
        ),
        compiler_params=pltpu.CompilerParams(
            dimension_semantics=("arbitrary", "arbitrary"),  # stats accumulate across grid
            vmem_limit_bytes=vmem1,
        ),
    )(x, w2d)

    # ---- fold BN into one per-channel scale/shift (tiny (C_out,1) XLA ops) -------
    n = jnp.float32(B * L)
    mean = s1 / n
    var = jnp.maximum(s2 / n - mean * mean, 0.0)        # biased var (BN training mode)
    scale = gamma.reshape(C_out, 1).astype(jnp.float32) * jax.lax.rsqrt(var + BN_EPS)
    shift = beta.reshape(C_out, 1).astype(jnp.float32) - scale * mean

    # ---- pass 2: normalize + ReLU, in place over y --------------------------------
    out = pl.pallas_call(
        _scale_shift_relu_kernel,
        out_shape=jax.ShapeDtypeStruct((B, C_out, L), jnp.float32),
        grid=grid,
        in_specs=[
            pl.BlockSpec((pl.Squeezed(), C_out, tile_l), lambda b, t: (b, 0, t)),
            pl.BlockSpec((C_out, 1), lambda b, t: (0, 0)),
            pl.BlockSpec((C_out, 1), lambda b, t: (0, 0)),
        ],
        out_specs=pl.BlockSpec((pl.Squeezed(), C_out, tile_l), lambda b, t: (b, 0, t)),
        input_output_aliases={0: 0},                    # overwrite the y buffer
        compiler_params=pltpu.CompilerParams(
            dimension_semantics=("parallel", "parallel"),  # megacore-friendly on v7x
            vmem_limit_bytes=vmem2,
        ),
    )(y, scale, shift)

    return out


conv_bn_relu_1d = jax.jit(_conv_bn_relu_1d_impl)


def _reference(x, weight, bias, gamma, beta):
    # Pure-JAX reference (training-mode BN, conv bias included) for a sanity check.
    y = jnp.einsum("oc,bcl->bol", weight[:, :, 0], x) + bias[None, :, None]
    mean = jnp.mean(y, axis=(0, 2), keepdims=True)
    var = jnp.mean((y - mean) ** 2, axis=(0, 2), keepdims=True)
    y_hat = (y - mean) / jnp.sqrt(var + BN_EPS)
    out = gamma[None, :, None] * y_hat + beta[None, :, None]
    return jnp.maximum(out, 0.0)


def _run_case(key, B, C_in, C_out, L, atol, rtol):
    kx, kw, kb = jax.random.split(key, 3)
    x = jax.random.normal(kx, (B, C_in, L), dtype=jnp.float32)

    bound = 1.0 / (C_in * 1) ** 0.5
    weight = jax.random.uniform(kw, (C_out, C_in, 1), jnp.float32, -bound, bound)
    bias = jax.random.uniform(kb, (C_out,), jnp.float32, -bound, bound)
    gamma = jnp.ones((C_out,), jnp.float32)
    beta = jnp.zeros((C_out,), jnp.float32)

    out = conv_bn_relu_1d(x, weight, bias, gamma, beta)
    out = jax.block_until_ready(out)

    ref = _reference(x, weight, bias, gamma, beta)
    assert out.shape == (B, C_out, L)
    assert jnp.allclose(out, ref, atol=atol, rtol=rtol), (
        f"mismatch vs reference for shape B={B} C_in={C_in} C_out={C_out} L={L}")


if __name__ == "__main__":
    key = jax.random.PRNGKey(0)
    k_small, k_large = jax.random.split(key)

    # Small shape (matches the toy module sizes).
    _run_case(k_small, B=2, C_in=4, C_out=8, L=16, atol=1e-5, rtol=1e-5)

    # Larger shape that actually exercises the L-tiling / accumulator path.
    _run_case(k_large, B=2, C_in=8, C_out=16, L=4096, atol=1e-4, rtol=1e-4)

    print("KERNEL_OK")
</pallas_src>

<mosaic_0001>
module attributes {stable_mosaic.version = 11 : i64} {
  func.func @_conv_stats_kernel(%arg0: i32, %arg1: i32, %arg2: memref<1x4x16xf32, #tpu.memory_space<vmem>>, %arg3: memref<8x4xf32, #tpu.memory_space<vmem>>, %arg4: memref<1x8x16xf32, #tpu.memory_space<vmem>>, %arg5: memref<8x1xf32, #tpu.memory_space<vmem>>, %arg6: memref<8x1xf32, #tpu.memory_space<vmem>>) attributes {dimension_semantics = [#tpu.dimension_semantics<arbitrary>, #tpu.dimension_semantics<arbitrary>], iteration_bounds = array<i64: 2, 1>, scalar_prefetch = 0 : i64, scratch_operands = 0 : i64, tpu.core_type = #tpu.core_type<tc>, window_params = [{transform_indices = @transform_0, window_bounds = array<i64: 1, 4, 16>}, {pipeline_mode = #tpu.pipeline_mode<synchronous>, transform_indices = @transform_1, window_bounds = array<i64: 8, 4>}, {transform_indices = @transform_2, window_bounds = array<i64: 1, 8, 16>}, {pipeline_mode = #tpu.pipeline_mode<synchronous>, transform_indices = @transform_3, window_bounds = array<i64: 8, 1>}, {pipeline_mode = #tpu.pipeline_mode<synchronous>, transform_indices = @transform_4, window_bounds = array<i64: 8, 1>}]} {
    %c0_i32 = arith.constant 0 : i32
    %0 = arith.cmpi eq, %arg0, %c0_i32 : i32
    %c0_i32_0 = arith.constant 0 : i32
    %1 = arith.cmpi eq, %arg1, %c0_i32_0 : i32
    %2 = arith.andi %0, %1 : i1
    %3 = arith.extui %2 : i1 to i32
    %c0_i32_1 = arith.constant 0 : i32
    %4 = arith.cmpi ne, %3, %c0_i32_1 : i32
    scf.if %4 {
      %cst_19 = arith.constant 0.000000e+00 : f32
      %23 = vector.broadcast %cst_19 : f32 to vector<8x1xf32>
      %c0_20 = arith.constant 0 : index
      %c0_21 = arith.constant 0 : index
      %24 = vector.load %arg5[%c0_20, %c0_21] : memref<8x1xf32, #tpu.memory_space<vmem>>, vector<8x1xf32>
      tpu.vector_store %arg5[%c0_20, %c0_21], %23 {strides = array<i32>} : memref<8x1xf32, #tpu.memory_space<vmem>>, vector<8x1xf32>,
      %cst_22 = arith.constant 0.000000e+00 : f32
      %25 = vector.broadcast %cst_22 : f32 to vector<8x1xf32>
      %c0_23 = arith.constant 0 : index
      %c0_24 = arith.constant 0 : index
      %26 = vector.load %arg6[%c0_23, %c0_24] : memref<8x1xf32, #tpu.memory_space<vmem>>, vector<8x1xf32>
      tpu.vector_store %arg6[%c0_23, %c0_24], %25 {strides = array<i32>} : memref<8x1xf32, #tpu.memory_space<vmem>>, vector<8x1xf32>,
    } else {
    }
    %c0 = arith.constant 0 : index
    %c0_2 = arith.constant 0 : index
    %5 = vector.load %arg3[%c0, %c0_2] : memref<8x4xf32, #tpu.memory_space<vmem>>, vector<8x4xf32>
    %c0_3 = arith.constant 0 : index
    %c0_4 = arith.constant 0 : index
    %c0_5 = arith.constant 0 : index
    %6 = vector.load %arg2[%c0_3, %c0_4, %c0_5] : memref<1x4x16xf32, #tpu.memory_space<vmem>>, vector<1x4x16xf32>
    %7 = vector.shape_cast %6 : vector<1x4x16xf32> to vector<4x16xf32>
    %cst = arith.constant dense<0.000000e+00> : vector<8x16xf32>
    %8 = tpu.matmul %5, %7, %cst {dimension_numbers = #tpu.dot_dimension_numbers<[1], [0], [0], [1], [0, 0, 1, 1], [], []>} : vector<8x4xf32>, vector<4x16xf32>, vector<8x16xf32> -> vector<8x16xf32>
    %c0_6 = arith.constant 0 : index
    %c0_7 = arith.constant 0 : index
    %c0_8 = arith.constant 0 : index
    %9 = vector.load %arg4[%c0_6, %c0_7, %c0_8] : memref<1x8x16xf32, #tpu.memory_space<vmem>>, vector<1x8x16xf32>
    %10 = vector.shape_cast %9 : vector<1x8x16xf32> to vector<8x16xf32>
    %11 = vector.shape_cast %8 : vector<8x16xf32> to vector<1x8x16xf32>
    tpu.vector_store %arg4[%c0_6, %c0_7, %c0_8], %11 {strides = array<i32>} : memref<1x8x16xf32, #tpu.memory_space<vmem>>, vector<1x8x16xf32>,
    %c0_9 = arith.constant 0 : index
    %c0_10 = arith.constant 0 : index
    %12 = vector.load %arg5[%c0_9, %c0_10] : memref<8x1xf32, #tpu.memory_space<vmem>>, vector<8x1xf32>
    %cst_11 = arith.constant dense<0.000000e+00> : vector<8xf32>
    %13 = vector.multi_reduction <add>, %8, %cst_11 [1] : vector<8x16xf32> to vector<8xf32>
    %14 = vector.shape_cast %13 : vector<8xf32> to vector<8x1xf32>
    %15 = arith.addf %12, %14 : vector<8x1xf32>
    %c0_12 = arith.constant 0 : index
    %c0_13 = arith.constant 0 : index
    %16 = vector.load %arg5[%c0_12, %c0_13] : memref<8x1xf32, #tpu.memory_space<vmem>>, vector<8x1xf32>
    tpu.vector_store %arg5[%c0_12, %c0_13], %15 {strides = array<i32>} : memref<8x1xf32, #tpu.memory_space<vmem>>, vector<8x1xf32>,
    %c0_14 = arith.constant 0 : index
    %c0_15 = arith.constant 0 : index
    %17 = vector.load %arg6[%c0_14, %c0_15] : memref<8x1xf32, #tpu.memory_space<vmem>>, vector<8x1xf32>
    %18 = arith.mulf %8, %8 : vector<8x16xf32>
    %cst_16 = arith.constant dense<0.000000e+00> : vector<8xf32>
    %19 = vector.multi_reduction <add>, %18, %cst_16 [1] : vector<8x16xf32> to vector<8xf32>
    %20 = vector.shape_cast %19 : vector<8xf32> to vector<8x1xf32>
    %21 = arith.addf %17, %20 : vector<8x1xf32>
    %c0_17 = arith.constant 0 : index
    %c0_18 = arith.constant 0 : index
    %22 = vector.load %arg6[%c0_17, %c0_18] : memref<8x1xf32, #tpu.memory_space<vmem>>, vector<8x1xf32>
    tpu.vector_store %arg6[%c0_17, %c0_18], %21 {strides = array<i32>} : memref<8x1xf32, #tpu.memory_space<vmem>>, vector<8x1xf32>,
    return
  }
  func.func @transform_0(%arg0: i32, %arg1: i32) -> (i32, i32, i32) {
    %c0_i32 = arith.constant 0 : i32
    %c0_i32_0 = arith.constant 0 : i32
    return %arg0, %c0_i32, %arg1 : i32, i32, i32
  }
  func.func @transform_1(%arg0: i32, %arg1: i32) -> (i32, i32) {
    %c0_i32 = arith.constant 0 : i32
    %c0_i32_0 = arith.constant 0 : i32
    %c0_i32_1 = arith.constant 0 : i32
    return %c0_i32, %c0_i32_0 : i32, i32
  }
  func.func @transform_2(%arg0: i32, %arg1: i32) -> (i32, i32, i32) {
    %c0_i32 = arith.constant 0 : i32
    %c0_i32_0 = arith.constant 0 : i32
    return %arg0, %c0_i32, %arg1 : i32, i32, i32
  }
  func.func @transform_3(%arg0: i32, %arg1: i32) -> (i32, i32) {
    %c0_i32 = arith.constant 0 : i32
    %c0_i32_0 = arith.constant 0 : i32
    %c0_i32_1 = arith.constant 0 : i32
    return %c0_i32, %c0_i32_0 : i32, i32
  }
  func.func @transform_4(%arg0: i32, %arg1: i32) -> (i32, i32) {
    %c0_i32 = arith.constant 0 : i32
    %c0_i32_0 = arith.constant 0 : i32
    %c0_i32_1 = arith.constant 0 : i32
    return %c0_i32, %c0_i32_0 : i32, i32
  }
}

module attributes {stable_mosaic.version = 11 : i64} {
  func.func @_scale_shift_relu_kernel(%arg0: i32, %arg1: i32, %arg2: memref<1x8x16xf32, #tpu.memory_space<vmem>>, %arg3: memref<8x1xf32, #tpu.memory_space<vmem>>, %arg4: memref<8x1xf32, #tpu.memory_space<vmem>>, %arg5: memref<1x8x16xf32, #tpu.memory_space<vmem>>) attributes {dimension_semantics = [#tpu.dimension_semantics<parallel>, #tpu.dimension_semantics<parallel>], iteration_bounds = array<i64: 2, 1>, scalar_prefetch = 0 : i64, scratch_operands = 0 : i64, tpu.core_type = #tpu.core_type<tc>, window_params = [{transform_indices = @transform_0, window_bounds = array<i64: 1, 8, 16>}, {pipeline_mode = #tpu.pipeline_mode<synchronous>, transform_indices = @transform_1, window_bounds = array<i64: 8, 1>}, {pipeline_mode = #tpu.pipeline_mode<synchronous>, transform_indices = @transform_2, window_bounds = array<i64: 8, 1>}, {transform_indices = @transform_3, window_bounds = array<i64: 1, 8, 16>}]} {
    %c0 = arith.constant 0 : index
    %c0_0 = arith.constant 0 : index
    %0 = vector.load %arg3[%c0, %c0_0] : memref<8x1xf32, #tpu.memory_space<vmem>>, vector<8x1xf32>
    %c0_1 = arith.constant 0 : index
    %c0_2 = arith.constant 0 : index
    %c0_3 = arith.constant 0 : index
    %1 = vector.load %arg2[%c0_1, %c0_2, %c0_3] : memref<1x8x16xf32, #tpu.memory_space<vmem>>, vector<1x8x16xf32>
    %2 = vector.shape_cast %1 : vector<1x8x16xf32> to vector<8x16xf32>
    %3 = vector.broadcast %0 : vector<8x1xf32> to vector<8x16xf32>
    %4 = arith.mulf %3, %2 : vector<8x16xf32>
    %c0_4 = arith.constant 0 : index
    %c0_5 = arith.constant 0 : index
    %5 = vector.load %arg4[%c0_4, %c0_5] : memref<8x1xf32, #tpu.memory_space<vmem>>, vector<8x1xf32>
    %6 = vector.broadcast %5 : vector<8x1xf32> to vector<8x16xf32>
    %7 = arith.addf %4, %6 : vector<8x16xf32>
    %cst = arith.constant 0.000000e+00 : f32
    %8 = vector.broadcast %cst : f32 to vector<8x16xf32>
    %9 = arith.maximumf %7, %8 : vector<8x16xf32>
    %c0_6 = arith.constant 0 : index
    %c0_7 = arith.constant 0 : index
    %c0_8 = arith.constant 0 : index
    %10 = vector.load %arg5[%c0_6, %c0_7, %c0_8] : memref<1x8x16xf32, #tpu.memory_space<vmem>>, vector<1x8x16xf32>
    %11 = vector.shape_cast %10 : vector<1x8x16xf32> to vector<8x16xf32>
    %12 = vector.shape_cast %9 : vector<8x16xf32> to vector<1x8x16xf32>
    tpu.vector_store %arg5[%c0_6, %c0_7, %c0_8], %12 {strides = array<i32>} : memref<1x8x16xf32, #tpu.memory_space<vmem>>, vector<1x8x16xf32>,
    return
  }
  func.func @transform_0(%arg0: i32, %arg1: i32) -> (i32, i32, i32) {
    %c0_i32 = arith.constant 0 : i32
    %c0_i32_0 = arith.constant 0 : i32
    return %arg0, %c0_i32, %arg1 : i32, i32, i32
  }
  func.func @transform_1(%arg0: i32, %arg1: i32) -> (i32, i32) {
    %c0_i32 = arith.constant 0 : i32
    %c0_i32_0 = arith.constant 0 : i32
    %c0_i32_1 = arith.constant 0 : i32
    return %c0_i32, %c0_i32_0 : i32, i32
  }
  func.func @transform_2(%arg0: i32, %arg1: i32) -> (i32, i32) {
    %c0_i32 = arith.constant 0 : i32
    %c0_i32_0 = arith.constant 0 : i32
    %c0_i32_1 = arith.constant 0 : i32
    return %c0_i32, %c0_i32_0 : i32, i32
  }
  func.func @transform_3(%arg0: i32, %arg1: i32) -> (i32, i32, i32) {
    %c0_i32 = arith.constant 0 : i32
    %c0_i32_0 = arith.constant 0 : i32
    return %arg0, %c0_i32, %arg1 : i32, i32, i32
  }
}

</mosaic_0001>

<bundles_post_ra>
// kernel: _conv_bn_relu_1d_impl.3
= control target key start
LH: loop header
LB: loop body
LE: loop exit
PB: predicated region body
PF: predicated region fallthrough
CT: control target
= control target key end

     0   :  { %8 = vsyncpa [#allocation3], 0  ;;  %s666_s0 = inlined_call_operand.hbm [shape: f32[2,8,16], index: 0, kind: input, shape index: {}, may-alias: {0,3}]   ;;  %s667_s1 = inlined_call_operand.vmem [shape: f32[8,1], index: 1, kind: input, shape index: {}]   ;;  %s668_s2 = inlined_call_operand.vmem [shape: f32[8,1], index: 2, kind: input, shape index: {}]   ;;  %s669_s3 = inlined_call_operand.hbm [shape: f32[2,8,16], index: 3, kind: output, shape index: {}, may-alias: {0,3}]  }
   0x1   :  { %10 = vsyncpa [#allocation3 + $0x1], 0 }
   0x2   :  { %11 = vsyncpa [#allocation4], 0 }
   0x3   :  { %13 = vsyncpa [#allocation4 + $0x1], 0  ;;  %s526_s12 = smov 0   ;;  %s528_s13 = smov 0  }
   0x4   :  { %s530_s14 = smov 0   ;;  %s532_s15 = smov 0  }
   0x5   :  { %s534_s16 = smov 0   ;;  %s536_s17 = smov 0  }
   0x6 LB: > { %s316_s18 = sadd.s32 4294967295, %s501_s17   ;;  %s317_s19 = sadd.s32 4294967294, %s501_s17   ;;  %s501_s17 = sphi %s536_s17, %s19_s17   ;;  %s497_s16 = sphi %s534_s16, %s681_s16   ;;  %s493_s15 = sphi %s532_s15, %s680_s15   ;;  %s489_s14 = sphi %s530_s14, %s679_s14   ;;  %s485_s13 = sphi %s528_s13, %s678_s13   ;;  %s481_s12 = sphi %s526_s12, %s677_s12  }
   0x7   : > { %s31_s20 = sadd.s32 1, %s497_s16  ;;  %s40_s21 = sadd.s32 1, %s489_s14 }
   0x8   : > { %p33_p0 = scmp.ge.s32.totalorder %s31_s20, 2  ;;  %p47_p1 = scmp.ne.s32.totalorder %s489_s14, %s485_s13 }
   0x9   : > { %p48_p2 = scmp.eq.s32.totalorder %s501_s17, 0  ;;  %p53_p3 = scmp.ne.s32.totalorder %s485_s13, %s481_s12 }
   0xa   : > { %s683_s20 = smov (%p33_p0, %s31_s20), 0  ;;  %p54_p5 = scmp.eq.s32.totalorder %s316_s18, 0 }
   0xb   : > { %p567_p4 = por %p48_p2, %p47_p1  ;;  %s35_s23 = ssub.s32 %s497_s16, %s683_s20 }
   0xc   : > { %p121_p6 = scmp.eq.s32.totalorder %s316_s18, 1  ;;  %p38_p7 = scmp.eq.s32.totalorder %s35_s23, 0 }
   0xd   : > { %p573_p8 = por %p54_p5, %p53_p3  ;;  %p127_p10 = scmp.eq.s32.totalorder %s317_s19, 1 }
   0xe   : > { %p577_p9 = por %p121_p6, %p47_p1  ;;  %p341_p13 = scmp.lt.s32.totalorder %s501_s17, 2 }
   0xf   : > { %s582_s26 = scalar_select %p38_p7, %s489_s14, %s40_s21  }
  0x10   : > { %p584_p11 = por %p127_p10, %p53_p3  ;;  %s153_s28 = sand.u32 1, %s489_s14  }
  0x11   : > { %s320_s29 = sshll.u32 %s153_s28, 3  ;;  %s321_s30 = sshll.u32 %s497_s16, 7 }
  0x12   : > { %s673_s27 = scalar_select %p584_p11, 1, 0 }
  0x13   : > { %s163_s6 = scalar_lea.hbm %s666_s0, %s321_s30  ;;  %s157_s7 = scalar_lea.vmem [#allocation2], %s320_s29 }
  0x14   : > { %s165_s8 = sshll.u32 %s157_s7, 4  ;;  %p597_p0 = pnand %p341_p13, %p567_p4  ;;  %s166_s8 = int_to_ptr.vmem [resolvable:$true] %s165_s8 }
  0x15   : > { %p322_p1 = scmp.ge.s32.totalorder %s501_s17, 1  ;;  %p170_p2 = scmp.lt.s32.totalorder %s501_s17, 3 }
  0x16   : > { %s154_s10 = scalar_lea.sflag [#allocation3], %s153_s28  ;;  %p395_p3 = pneg %p597_p0 }
  0x17   : > { %s406_s11 = scalar_lea.vmem %s166_s8, 128  ;;  %s503_s18 = smov [#allocation2]  }
  0x18   : > { %p407_p5 = scmp.ne.s32.totalorder %s166_s8, %s406_s11  ;;  %s411_s19 = sshll.u32 %s503_s18, 4  ;;  %s412_s19 = int_to_ptr.vmem [resolvable:$false] %s411_s19 }
  0x19   : > { %s413_s21 = scalar_lea.vmem %s412_s19, 256  ;;  %p414_p10 = scmp.lt.s32.totalorder %s166_s8, %s412_s19 }
  0x1a   : > { %p409_p6 = pnand %p407_p5, %p395_p3  ;;  %p415_p12 = scmp.lt.s32.totalorder %s413_s21, %s406_s11 }
  0x1c   : > { %p410_p7 = pneg %p409_p6  ;;  %p416_p4 = por %p415_p12, %p414_p10 }
  0x1e   : > { %p417_p13 = pnand %p416_p4, %p410_p7 }
  0x20   : > { %420 = shalt.err (!%p417_p13)
}
  0x21   : > { %336 = dma.hbm_to_vmem [thread:$0]  (!%p597_p0), %s163_s6, 128, %s166_s8, %s154_s10  }
  0x22   : > { %p171_p11 = pnand %p322_p1, %p170_p2 }
  0x23   : > { %s612_s22 = sand.u32 (!%p171_p11), 1, %s485_s13  }
  0x24   : > { %174 = sbr.rel (%p171_p11) target bundleno = 189 (0xbd), region = 32  ;;  %s323_s23 = sshll.u32 (!%p171_p11), %s612_s22, 3 }
  0x25   : > { %s177_s28 = scalar_lea.sflag (!%p171_p11), [#allocation3], %s612_s22  ;;  %s180_s29 = scalar_lea.vmem (!%p171_p11), [#allocation2], %s323_s23 }
  0x29   : > { %472 = dma.done.wait (%p573_p8), %s177_s28, 128  }
  0x2a   : > { %474 = vsyncadd (%p573_p8), %s177_s28, 4294967168  ;;  %v504_v0 = vmov 0   ;;  %v203_v1 = vld [vmem:[%s667_s1] sm:$0xff]  ;;  %s326_s24 = sshll.u32 %s493_s15, 7  ;;  %s202_s7 = scalar_lea.vmem [#allocation5], %s323_s23  ;;  %vm219_vm0 = vcmask 130048  }
  0x2b   : > { %392 = vset.pattern.permute.xlu0 %v504_v0  ;;  %v211_v2 = vld [vmem:[%s668_s2] sm:$0xff]  ;;  %s236_s8 = sshll.u32 %s202_s7, 4  ;;  %s234_s11 = scalar_lea.hbm %s669_s3, %s326_s24  ;;  %s237_s8 = int_to_ptr.vmem [resolvable:$true] %s236_s8 }
  0x2c   : > { %207 = vperm.xlu0 %392, %v203_v1   ;;  %v204_v3 = vld [vmem:[%s180_s29] sm:$0xff]  ;;  %s222_s18 = scalar_lea.sflag [#allocation4], %s612_s22  ;;  %s421_s19 = scalar_lea.vmem %s237_s8, 128 }
  0x2d   : > { %p422_p8 = scmp.ne.s32.totalorder %s237_s8, %s421_s19  ;;  %s505_s21 = smov [#allocation5]  }
  0x2e   : > { %s425_s28 = sshll.u32 %s505_s21, 4  ;;  %s426_s28 = int_to_ptr.vmem [resolvable:$false] %s425_s28 }
  0x2f   : > { %p423_p11 = pnand %p422_p8, %p577_p9  ;;  %s427_s15 = scalar_lea.vmem %s426_s28, 256 }
  0x30   : > { %214 = vperm.xlu0 %392, %v211_v2   ;;  %p428_p0 = scmp.lt.s32.totalorder %s237_s8, %s426_s28  ;;  %p429_p1 = scmp.lt.s32.totalorder %s427_s15, %s421_s19 }
  0x31   : > { %p424_p12 = pneg %p423_p11 }
  0x32   : > { %p430_p2 = por %p429_p1, %p428_p0 }
  0x34   : > { %p431_p3 = pnand %p430_p2, %p424_p12 }
  0xa7   : > { %v208_v4 = vpop.permute.xlu0 %207 }
  0xa8   : > { %v210_v5 = vmul.f32 %v208_v4, %v204_v3 }
  0xab   : > { %v215_v6 = vpop.permute.xlu0 %214 }
  0xac   : > { %v217_v7 = vadd.f32 %v215_v6, %v210_v5 }
  0xae   : > { %v218_v8 = vmax.f32 %v217_v7, 0.0 }
  0xb0   : > { %220 = vst.msk [vmem:[%s202_s7] sm:$0xff] %vm219_vm0, %v218_v8 }
  0xb1   : > { %434 = shalt.err (!%p431_p3)
}
  0xb2   : > { %s435_s23 = scalar_lea.hbm %s234_s11, 128  ;;  %s439_s30 = scalar_lea.hbm %s669_s3, 256 }
  0xb3   : > { %p436_p5 = scmp.ne.s32.totalorder %s234_s11, %s435_s23  ;;  %p440_p10 = scmp.lt.s32.totalorder %s234_s11, %s669_s3 }
  0xb4   : > { %p441_p4 = scmp.lt.s32.totalorder %s439_s30, %s435_s23 }
  0xb5   : > { %p437_p6 = pnand %p436_p5, %p577_p9 }
  0xb6   : > { %p442_p13 = por %p441_p4, %p440_p10 }
  0xb7   : > { %p438_p7 = pneg %p437_p6 }
  0xb9   : > { %p443_p8 = pnand %p442_p13, %p438_p7 }
  0xbb   : > { %446 = shalt.err (!%p443_p8)
}
  0xbc   : > { %331 = dma.vmem_to_hbm [thread:$0]  (%p577_p9), %s237_s8, 128, %s234_s11, %s222_s18  }
  0xbd PF: > { %s248_s6 = sand.u32 1, %s481_s12   ;;  %p675_p11 = scmp.ne.s32.totalorder %s673_s27, 0 }
  0xbe   : > { %p676_p12 = scmp.ge.s32.totalorder %s501_s17, 2  ;;  %s249_s24 = scalar_lea.sflag [#allocation4], %s248_s6 }
  0xc0   : > { %p338_p0 = pnand %p676_p12, %p675_p11 }
  0xc2   : > { %p339_p1 = pneg %p338_p0 }
  0xc4   : > { %476 = dma.done.wait (%p339_p1), %s249_s24, 128  }
  0xc5   : > { %478 = vsyncadd (%p339_p1), %s249_s24, 4294967168  ;;  %s19_s17 = sadd.s32 1, %s501_s17   ;;  %s677_s12 = smov %s485_s13 }
  0xc6   : > { %p16_p2 = scmp.ge.s32.totalorder %s19_s17, 4   ;;  %s678_s13 = smov %s489_s14 }
  0xc7   : > { %s679_s14 = smov %s582_s26  ;;  %s680_s15 = smov %s497_s16 }
  0xc8   : > { %s681_s16 = smov %s683_s20  ;;  %18 = sbr.rel (!%p16_p2) target bundleno = 6 (0x6), region = 77 }
  0xcd   :  { %254 = vsyncpa [#allocation3], 1 }
  0xce   :  { %256 = vsyncpa [#allocation3 + $0x1], 1 }
  0xcf   :  { %257 = vsyncpa [#allocation4], 1 }
  0xd0   :  { %259 = vsyncpa [#allocation4 + $0x1], 1 }

// kernel: _conv_bn_relu_1d_impl.2
= control target key start
LH: loop header
LB: loop body
LE: loop exit
PB: predicated region body
PF: predicated region fallthrough
CT: control target
= control target key end

     0   :  { %10 = vsyncpa [#allocation3], 0  ;;  %s731_s0 = inlined_call_operand.vmem [shape: f32[2,4,16], index: 0, kind: input, shape index: {}]   ;;  %s732_s1 = inlined_call_operand.vmem [shape: f32[8,4], index: 1, kind: input, shape index: {}]   ;;  %s733_s2 = inlined_call_operand.hbm [shape: f32[2,8,16], index: 2, kind: output, shape index: {0}]   ;;  %s734_s3 = inlined_call_operand.vmem [shape: f32[8,1], index: 3, kind: output, shape index: {1}]   ;;  %s735_s4 = inlined_call_operand.vmem [shape: f32[8,1], index: 4, kind: output, shape index: {2}]  }
   0x1   :  { %12 = vsyncpa [#allocation3 + $0x1], 0  ;;  %s603_s15 = smov 0   ;;  %s605_s16 = smov 0  }
   0x2   :  { %s607_s17 = smov 0   ;;  %s609_s18 = smov 0  }
   0x3   :  { %s611_s19 = smov 0   ;;  %s613_s20 = smov 0  }
   0x4 LB: > { %s416_s21 = sadd.s32 4294967295, %s572_s20   ;;  %s417_s22 = sadd.s32 4294967294, %s572_s20   ;;  %s572_s20 = sphi %s613_s20, %s18_s20   ;;  %s568_s19 = sphi %s611_s19, %s742_s19   ;;  %s564_s18 = sphi %s609_s18, %s741_s18   ;;  %s560_s17 = sphi %s607_s17, %s740_s17   ;;  %s556_s16 = sphi %s605_s16, %s739_s16   ;;  %s552_s15 = sphi %s603_s15, %s738_s15  }
   0x5   : > { %s30_s23 = sadd.s32 1, %s568_s19  ;;  %s88_s24 = sadd.s32 1, %s560_s17 }
   0x6   : > { %p32_p0 = scmp.ge.s32.totalorder %s30_s23, 2  ;;  %p98_p1 = scmp.ne.s32.totalorder %s560_s17, %s556_s16 }
   0x7   : > { %p99_p2 = scmp.eq.s32.totalorder %s416_s21, 1  ;;  %p104_p3 = scmp.ne.s32.totalorder %s556_s16, %s552_s15 }
   0x8   : > { %s744_s23 = smov (%p32_p0, %s30_s23), 0  ;;  %p105_p5 = scmp.eq.s32.totalorder %s417_s22, 1 }
   0x9   : > { %p643_p4 = por %p99_p2, %p98_p1  ;;  %s83_s26 = ssub.s32 %s568_s19, %s744_s23 }
   0xa   : > { %p420_p6 = scmp.ge.s32.totalorder %s572_s20, 1  ;;  %p86_p7 = scmp.eq.s32.totalorder %s83_s26, 0 }
   0xb   : > { %p650_p8 = por %p105_p5, %p104_p3  ;;  %p178_p9 = scmp.lt.s32.totalorder %s572_s20, 3 }
   0xc   : > { %s656_s28 = scalar_select %p86_p7, %s560_s17, %s88_s24  }
   0xd   : > { %p179_p10 = pnand %p420_p6, %p178_p9 }
   0xe   : > { %s199_s29 = sand.u32 (!%p179_p10), 1, %s556_s16   ;;  %p206_p11 = scmp.lt.s32.totalorder (!%p179_p10), %s564_s18, 1 }
   0xf   : > { %182 = sbr.rel (%p179_p10) target bundleno = 368 (0x170), region = 28  ;;  %s662_s30 = sshll.u32 (!%p179_p10), %s199_s29, 3 }
  0x10   : > { %p213_p12 = scmp.eq.s32.totalorder (!%p179_p10), %s564_s18, 0  ;;  %s201_s10 = scalar_lea.vmem (!%p179_p10), [#allocation2], %s662_s30 }
  0x14   : > { %s207_s5 = scalar_select %p206_p11, %s564_s18, 1  ;;  %vm219_vm0 = vcmask (%p213_p12), 7168   ;;  %v574_v0 = vmov (%p213_p12), 0.0  }
  0x15   : > { %218 = sbr.rel (!%p213_p12) target bundleno = 26 (0x1a), region = 32  ;;  %220 = vst.msk [vmem:[%s734_s3] sm:$0xff] (%p213_p12), %vm219_vm0, %v574_v0  ;;  %221 = vst.msk [vmem:[%s735_s4] sm:$0xff] (%p213_p12), %vm219_vm0, %v574_v0 }
  0x16   : > { %s422_s6 = sshll.u32 %s207_s5, 2 }
  0x17   : > { %s212_s9 = scalar_lea.vmem %s731_s0, %s422_s6 }
  0x1a PF: > { %v223_v1 = vld [vmem:[%s212_s9] sm:$0xf]  ;;  %vm228_vm1 = vcmask 1043456   ;;  %v575_v3 = vmov 0.0   ;;  %vm576_vm2 = vmmov 0   ;;  %vm224_vm3 = vcmask 31744  }
  0x1b   : > { %v222_v2 = vld [vmem:[%s732_s1] sm:$0xff]  ;;  %433 = vmatprep.subr.mxu0 %v575_v3  ;;  %435 = vmatprep.mubr.msk.f32.mxu0 %vm576_vm2, %v575_v3  ;;  %vm302_vm4 = vcmask 130048   ;;  %s427_s24 = sshll.u32 %s564_s18, 7  ;;  %s333_s26 = sshll.u32 %s201_s10, 4  ;;  %s334_s26 = int_to_ptr.vmem [resolvable:$true] %s333_s26 }
  0x1c   : > { %434 = vmatpush3.msk.msra.mxu0 %vm228_vm1, %v223_v1  ;;  %s331_s6 = scalar_lea.hbm %s733_s2, %s427_s24  ;;  %s319_s7 = scalar_lea.sflag [#allocation3], %s199_s29 }
  0x1d   : > { %436 = vmatmul.mubr.msk.f32.vlgmr.msra.gmra.mxu0 %vm224_vm3, %v222_v2  ;;  %s496_s8 = scalar_lea.vmem %s334_s26, 128  ;;  %s577_s9 = smov [#allocation2]  }
  0x1e   : > { %p497_p13 = scmp.ne.s32.totalorder %s334_s26, %s496_s8  ;;  %s500_s11 = sshll.u32 %s577_s9, 4  ;;  %s501_s11 = int_to_ptr.vmem [resolvable:$false] %s500_s11 }
  0x1f   : > { %s502_s12 = scalar_lea.vmem %s501_s11, 256  ;;  %p503_p2 = scmp.lt.s32.totalorder %s334_s26, %s501_s11 }
  0x20   : > { %p498_p0 = pnand %p497_p13, %p643_p4  ;;  %p504_p3 = scmp.lt.s32.totalorder %s502_s12, %s496_s8 }
  0x22   : > { %p499_p1 = pneg %p498_p0  ;;  %p505_p5 = por %p504_p3, %p503_p2 }
  0x24   : > { %p506_p6 = pnand %p505_p5, %p499_p1 }
  0xdd   : > { %v298_v4 = vpop.f32.mrf.mxu0 }
  0xde   : > { %v305_v5 = vsel %vm302_vm4, %v298_v4, 0.0  ;;  %303 = vst.msk [vmem:[%s201_s10] sm:$0xff] %vm302_vm4, %v298_v4  ;;  %v312_v6 = vmul.f32 %v298_v4, %v298_v4 }
  0xdf   : > { %306 = vadd.xlane.f32.xlu0 %v305_v5  ;;  %v437_v7 = vpop.f32.mrf.mxu0 }
  0xe0   : > { %v313_v8 = vsel %vm302_vm4, %v312_v6, 0.0 }
  0xe3   : > { %314 = vadd.xlane.f32.xlu0 %v313_v8 }
  0xe4   : > { %509 = shalt.err (!%p506_p6)
}
  0xe5   : > { %s510_s18 = scalar_lea.hbm %s331_s6, 128  ;;  %s514_s13 = scalar_lea.hbm %s733_s2, 256 }
  0xe6   : > { %p511_p7 = scmp.ne.s32.totalorder %s331_s6, %s510_s18  ;;  %p515_p11 = scmp.lt.s32.totalorder %s331_s6, %s733_s2 }
  0xe7   : > { %p516_p12 = scmp.lt.s32.totalorder %s514_s13, %s510_s18 }
  0xe8   : > { %p512_p9 = pnand %p511_p7, %p643_p4 }
  0xe9   : > { %p517_p13 = por %p516_p12, %p515_p11 }
  0xea   : > { %p513_p10 = pneg %p512_p9 }
  0xec   : > { %p518_p0 = pnand %p517_p13, %p513_p10 }
  0xee   : > { %521 = shalt.err (!%p518_p0)
}
  0xef   : > { %438 = dma.vmem_to_hbm [thread:$0]  (%p643_p4), %s334_s26, 128, %s331_s6, %s319_s7   ;;  %v304_v9 = vld [vmem:[%s734_s3] sm:$0xff]  ;;  %vm309_vm5 = vcmask 7168  }
  0xf0   : > { %v311_v12 = vld [vmem:[%s735_s4] sm:$0xff] }
 0x168   : > { %v307_v10 = vpop.xlane.xlu0 %306 }
 0x169   : > { %v308_v11 = vadd.f32 %v307_v10, %v304_v9 }
 0x16b   : > { %310 = vst.msk [vmem:[%s734_s3] sm:$0xff] %vm309_vm5, %v308_v11 }
 0x16c   : > { %v315_v13 = vpop.xlane.xlu0 %314 }
 0x16d   : > { %v316_v14 = vadd.f32 %v315_v13, %v311_v12 }
 0x16f   : > { %317 = vst.msk [vmem:[%s735_s4] sm:$0xff] %vm309_vm5, %v316_v14 }
 0x170 PF: > { %p444_p4 = scmp.ge.s32.totalorder %s572_s20, 2  ;;  %s357_s26 = sand.u32 1, %s552_s15  }
 0x171   : > { %s358_s6 = scalar_lea.sflag [#allocation3], %s357_s26 }
 0x172   : > { %p441_p1 = pnand %p444_p4, %p650_p8 }
 0x174   : > { %p442_p2 = pneg %p441_p1 }
 0x176   : > { %547 = dma.done.wait (%p442_p2), %s358_s6, 128  }
 0x177   : > { %549 = vsyncadd (%p442_p2), %s358_s6, 4294967168  ;;  %s18_s20 = sadd.s32 1, %s572_s20   ;;  %s738_s15 = smov %s556_s16 }
 0x178   : > { %p15_p3 = scmp.ge.s32.totalorder %s18_s20, 4   ;;  %s739_s16 = smov %s560_s17 }
 0x179   : > { %s740_s17 = smov %s656_s28  ;;  %s741_s18 = smov %s568_s19 }
 0x17a   : > { %s742_s19 = smov %s744_s23  ;;  %17 = sbr.rel (!%p15_p3) target bundleno = 4 (0x4), region = 83 }
 0x17f   :  { %363 = vsyncpa [#allocation3], 1 }
 0x180   :  { %365 = vsyncpa [#allocation3 + $0x1], 1 }

</bundles_post_ra>
